<compile_context>
chip_gen: v6e
topology: v6e:2x2x1
jax: 0.10.0
libtpu: 0.0.40
codegen_flags: <defaults>
</compile_context>

<pallas_src>
import functools

import jax
import jax.numpy as jnp
from jax.experimental import pallas as pl
from jax.experimental.pallas import tpu as pltpu

INPUT_DIM = 3
PAD_DIM = 8                                   # lane/sublane-friendly padding of the 3-wide edges
# Original: encoder 3 -> 128 -> 64 -> 32 ; decoder 32 -> 64 -> 128 -> 3
DIMS = [INPUT_DIM, 128, 64, 32, 64, 128, INPUT_DIM]
RELU_AFTER = [True, True, False, True, True, False]      # original 6-layer structure
# After fusing layers 3&4 (no ReLU between them) the kernel sees 5 layers.
FUSED_DIMS = [PAD_DIM, 128, 64, 64, 128, PAD_DIM]
RELU_AFTER_FUSED = [True, True, True, True, False]


def _round_up(n, m):
    return ((n + m - 1) // m) * m


def _choose_tiling(batch, max_tile=2048):
    """Lane-aligned batch tile with an even number of grid steps (v7x megacore)."""
    n_steps = max(2, pl.cdiv(batch, max_tile))
    if n_steps % 2:
        n_steps += 1                                      # 2 TCs/chip on v7x
    bt = _round_up(pl.cdiv(batch, n_steps), 128)          # lane-dense tiles -> unmasked vst
    return bt, bt * n_steps, n_steps


def _autoencoder_kernel(x_ref,
                        w1_ref, b1_ref, w2_ref, b2_ref, w3_ref, b3_ref,
                        w4_ref, b4_ref, w5_ref, b5_ref,
                        o_ref):
    """5 fused layers, feature-major: hT <- relu(W^T @ hT + b), batch on lanes.

    bf16 MXU operands, f32 accumulation / bias / ReLU."""
    ws = (w1_ref, w2_ref, w3_ref, w4_ref, w5_ref)
    bs = (b1_ref, b2_ref, b3_ref, b4_ref, b5_ref)

    h = x_ref[...]                                        # (PAD_DIM, bt) bf16
    for li, (w_ref, b_ref) in enumerate(zip(ws, bs)):
        acc = jnp.dot(w_ref[...], h, preferred_element_type=jnp.float32)
        acc = acc + b_ref[...]                            # (d_out, 1) f32 bias, lane-broadcast
        if RELU_AFTER_FUSED[li]:
            acc = jnp.maximum(acc, 0.0)
        h = acc.astype(jnp.bfloat16) if li < 4 else acc   # bf16 feed for next MXU pass
    o_ref[...] = h.astype(o_ref.dtype)


def prepare_params(params):
    """ONE-TIME param prep (keep out of the per-call path).

    params: list of 6 (W (d_in, d_out) f32, b (1, d_out) f32).
    Returns 10 arrays: per fused layer Wt (d_out, d_in) bf16 and b (d_out, 1) f32."""
    ws = [jnp.asarray(w, jnp.float32) for w, _ in params]
    bs = [jnp.asarray(b, jnp.float32).reshape(1, -1) for _, b in params]

    # Algebraic fusion of layer 3 (64->32, no ReLU) with layer 4 (32->64).
    # TODO(synk): if the 32-d latent itself is ever needed, skip this fusion.
    w34 = ws[2] @ ws[3]                                   # (64, 64)
    b34 = bs[2] @ ws[3] + bs[3]                           # (1, 64)
    ws = [ws[0], ws[1], w34, ws[4], ws[5]]
    bs = [bs[0], bs[1], b34, bs[4], bs[5]]

    # Pad the 3-wide edges to 8 (zero rows/cols are mathematically inert).
    ws[0] = jnp.zeros((PAD_DIM, ws[0].shape[1]), jnp.float32).at[:INPUT_DIM, :].set(ws[0])
    ws[-1] = jnp.zeros((ws[-1].shape[0], PAD_DIM), jnp.float32).at[:, :INPUT_DIM].set(ws[-1])
    bs[-1] = jnp.zeros((1, PAD_DIM), jnp.float32).at[:, :INPUT_DIM].set(bs[-1])

    flat = []
    for w, b in zip(ws, bs):
        flat.append(jnp.asarray(w.T, jnp.bfloat16))       # (d_out, d_in) bf16 -> full MXU rate
        flat.append(jnp.asarray(b.T, jnp.float32))        # (d_out, 1) f32
    return tuple(flat)


@functools.partial(jax.jit, static_argnames=("max_batch_tile",))
def autoencoder_forward(x, prepared, *, max_batch_tile=2048):
    """x: (B, INPUT_DIM) f32.  prepared: output of prepare_params.  Returns (B, INPUT_DIM) f32."""
    B, D = x.shape
    assert D == INPUT_DIM
    bt, Bp, n_steps = _choose_tiling(B, max_batch_tile)

    # Feature-major input: batch on the lane axis, bf16 (halves input DMA bytes).
    xT = jnp.zeros((PAD_DIM, Bp), jnp.bfloat16)
    xT = xT.at[:INPUT_DIM, :B].set(x.T.astype(jnp.bfloat16))

    in_specs = [pl.BlockSpec((PAD_DIM, bt), lambda i: (0, i))]
    for arr in prepared:
        # Small, grid-invariant operands: full-array blocks, constant index map
        # -> VMEM resident across all grid steps (~45 KB bf16 weights total).
        in_specs.append(pl.BlockSpec(arr.shape, lambda i: (0, 0)))
    out_spec = pl.BlockSpec((PAD_DIM, bt), lambda i: (0, i))

    flops_per_col = 2 * sum(FUSED_DIMS[i] * FUSED_DIMS[i + 1] for i in range(5))
    bytes_accessed = (int(xT.size) * 2 + Bp * PAD_DIM * 4
                      + sum(int(a.size) * a.dtype.itemsize for a in prepared))

    outT = pl.pallas_call(
        _autoencoder_kernel,
        out_shape=jax.ShapeDtypeStruct((PAD_DIM, Bp), jnp.float32),
        grid_spec=pltpu.PrefetchScalarGridSpec(
            num_scalar_prefetch=0,
            grid=(n_steps,),
            in_specs=in_specs,
            out_specs=out_spec,
        ),
        compiler_params=pltpu.CompilerParams(
            dimension_semantics=("parallel",)),            # batch axis megacore-shardable
        cost_estimate=pl.CostEstimate(
            flops=Bp * flops_per_col,
            transcendentals=0,
            bytes_accessed=int(bytes_accessed)),
    )(xT, *prepared)

    return outT[:INPUT_DIM, :B].T


def init_params(key):
    """Kaiming-uniform-ish init matching nn.Linear shapes.

    PyTorch stores weight as (out, in); we store the transpose (in, out)."""
    params = []
    for li in range(6):
        d_in, d_out = DIMS[li], DIMS[li + 1]
        key, kw, kb = jax.random.split(key, 3)
        bound = 1.0 / jnp.sqrt(d_in)
        w = jax.random.uniform(kw, (d_in, d_out), jnp.float32, -bound, bound)
        b = jax.random.uniform(kb, (1, d_out), jnp.float32, -bound, bound)
        params.append((w, b))
    return params


def reference_forward(x, params):
    """Plain-JAX 6-layer reference (original module structure) at the kernel's
    precision: bf16 matmul operands, f32 accumulation / bias / ReLU."""
    h = x.astype(jnp.bfloat16)
    for li, (w, b) in enumerate(params):
        acc = jnp.dot(h, w.astype(jnp.bfloat16),
                      preferred_element_type=jnp.float32) + b
        if RELU_AFTER[li]:
            acc = jnp.maximum(acc, 0.0)
        h = acc.astype(jnp.bfloat16) if li < 5 else acc
    return h


if __name__ == "__main__":
    key = jax.random.PRNGKey(0)
    key, kx = jax.random.split(key)

    # Deterministic small example: 500 3-dim vectors (not a tile multiple, so the
    # batch-padding path is exercised).  -> bt=256, Bp=512, grid=(2,) parallel.
    B = 500
    x = jax.random.normal(kx, (B, INPUT_DIM), jnp.float32)

    params = init_params(key)
    prepared = prepare_params(params)      # one-time fuse / pad / transpose / bf16-cast

    out = autoencoder_forward(x, prepared, max_batch_tile=2048)
    out = jax.block_until_ready(out)

    ref = reference_forward(x, params)
    assert out.shape == (B, INPUT_DIM)
    assert jnp.allclose(out, ref, atol=1e-2, rtol=1e-2), "mismatch vs reference"

    print("KERNEL_OK")
</pallas_src>

<mosaic_0001>
module attributes {stable_mosaic.version = 11 : i64} {
  func.func @_autoencoder_kernel(%arg0: i32, %arg1: memref<8x256xbf16, #tpu.memory_space<vmem>>, %arg2: memref<128x8xbf16, #tpu.memory_space<vmem>>, %arg3: memref<128x1xf32, #tpu.memory_space<vmem>>, %arg4: memref<64x128xbf16, #tpu.memory_space<vmem>>, %arg5: memref<64x1xf32, #tpu.memory_space<vmem>>, %arg6: memref<64x64xbf16, #tpu.memory_space<vmem>>, %arg7: memref<64x1xf32, #tpu.memory_space<vmem>>, %arg8: memref<128x64xbf16, #tpu.memory_space<vmem>>, %arg9: memref<128x1xf32, #tpu.memory_space<vmem>>, %arg10: memref<8x128xbf16, #tpu.memory_space<vmem>>, %arg11: memref<8x1xf32, #tpu.memory_space<vmem>>, %arg12: memref<8x256xf32, #tpu.memory_space<vmem>>) attributes {dimension_semantics = [#tpu.dimension_semantics<parallel>], iteration_bounds = array<i64: 2>, scalar_prefetch = 0 : i64, scratch_operands = 0 : i64, tpu.core_type = #tpu.core_type<tc>, window_params = [{transform_indices = @transform_0, window_bounds = array<i64: 8, 256>}, {pipeline_mode = #tpu.pipeline_mode<synchronous>, transform_indices = @transform_1, window_bounds = array<i64: 128, 8>}, {pipeline_mode = #tpu.pipeline_mode<synchronous>, transform_indices = @transform_2, window_bounds = array<i64: 128, 1>}, {pipeline_mode = #tpu.pipeline_mode<synchronous>, transform_indices = @transform_3, window_bounds = array<i64: 64, 128>}, {pipeline_mode = #tpu.pipeline_mode<synchronous>, transform_indices = @transform_4, window_bounds = array<i64: 64, 1>}, {pipeline_mode = #tpu.pipeline_mode<synchronous>, transform_indices = @transform_5, window_bounds = array<i64: 64, 64>}, {pipeline_mode = #tpu.pipeline_mode<synchronous>, transform_indices = @transform_6, window_bounds = array<i64: 64, 1>}, {pipeline_mode = #tpu.pipeline_mode<synchronous>, transform_indices = @transform_7, window_bounds = array<i64: 128, 64>}, {pipeline_mode = #tpu.pipeline_mode<synchronous>, transform_indices = @transform_8, window_bounds = array<i64: 128, 1>}, {pipeline_mode = #tpu.pipeline_mode<synchronous>, transform_indices = @transform_9, window_bounds = array<i64: 8, 128>}, {pipeline_mode = #tpu.pipeline_mode<synchronous>, transform_indices = @transform_10, window_bounds = array<i64: 8, 1>}, {transform_indices = @transform_11, window_bounds = array<i64: 8, 256>}]} {
    %c0 = arith.constant 0 : index
    %c0_0 = arith.constant 0 : index
    %0 = vector.load %arg1[%c0, %c0_0] : memref<8x256xbf16, #tpu.memory_space<vmem>>, vector<8x256xbf16>
    %c0_1 = arith.constant 0 : index
    %c0_2 = arith.constant 0 : index
    %1 = vector.load %arg2[%c0_1, %c0_2] : memref<128x8xbf16, #tpu.memory_space<vmem>>, vector<128x8xbf16>
    %cst = arith.constant dense<0.000000e+00> : vector<128x256xf32>
    %2 = tpu.matmul %1, %0, %cst {dimension_numbers = #tpu.dot_dimension_numbers<[1], [0], [0], [1], [0, 0, 1, 1], [], []>} : vector<128x8xbf16>, vector<8x256xbf16>, vector<128x256xf32> -> vector<128x256xf32>
    %c0_3 = arith.constant 0 : index
    %c0_4 = arith.constant 0 : index
    %3 = vector.load %arg3[%c0_3, %c0_4] : memref<128x1xf32, #tpu.memory_space<vmem>>, vector<128x1xf32>
    %4 = vector.broadcast %3 : vector<128x1xf32> to vector<128x256xf32>
    %5 = arith.addf %2, %4 : vector<128x256xf32>
    %cst_5 = arith.constant 0.000000e+00 : f32
    %6 = vector.broadcast %cst_5 : f32 to vector<128x256xf32>
    %7 = arith.maximumf %5, %6 : vector<128x256xf32>
    %8 = arith.truncf %7 : vector<128x256xf32> to vector<128x256xbf16>
    %c0_6 = arith.constant 0 : index
    %c0_7 = arith.constant 0 : index
    %9 = vector.load %arg4[%c0_6, %c0_7] : memref<64x128xbf16, #tpu.memory_space<vmem>>, vector<64x128xbf16>
    %cst_8 = arith.constant dense<0.000000e+00> : vector<64x256xf32>
    %10 = tpu.matmul %9, %8, %cst_8 {dimension_numbers = #tpu.dot_dimension_numbers<[1], [0], [0], [1], [0, 0, 1, 1], [], []>} : vector<64x128xbf16>, vector<128x256xbf16>, vector<64x256xf32> -> vector<64x256xf32>
    %c0_9 = arith.constant 0 : index
    %c0_10 = arith.constant 0 : index
    %11 = vector.load %arg5[%c0_9, %c0_10] : memref<64x1xf32, #tpu.memory_space<vmem>>, vector<64x1xf32>
    %12 = vector.broadcast %11 : vector<64x1xf32> to vector<64x256xf32>
    %13 = arith.addf %10, %12 : vector<64x256xf32>
    %cst_11 = arith.constant 0.000000e+00 : f32
    %14 = vector.broadcast %cst_11 : f32 to vector<64x256xf32>
    %15 = arith.maximumf %13, %14 : vector<64x256xf32>
    %16 = arith.truncf %15 : vector<64x256xf32> to vector<64x256xbf16>
    %c0_12 = arith.constant 0 : index
    %c0_13 = arith.constant 0 : index
    %17 = vector.load %arg6[%c0_12, %c0_13] : memref<64x64xbf16, #tpu.memory_space<vmem>>, vector<64x64xbf16>
    %cst_14 = arith.constant dense<0.000000e+00> : vector<64x256xf32>
    %18 = tpu.matmul %17, %16, %cst_14 {dimension_numbers = #tpu.dot_dimension_numbers<[1], [0], [0], [1], [0, 0, 1, 1], [], []>} : vector<64x64xbf16>, vector<64x256xbf16>, vector<64x256xf32> -> vector<64x256xf32>
    %c0_15 = arith.constant 0 : index
    %c0_16 = arith.constant 0 : index
    %19 = vector.load %arg7[%c0_15, %c0_16] : memref<64x1xf32, #tpu.memory_space<vmem>>, vector<64x1xf32>
    %20 = vector.broadcast %19 : vector<64x1xf32> to vector<64x256xf32>
    %21 = arith.addf %18, %20 : vector<64x256xf32>
    %cst_17 = arith.constant 0.000000e+00 : f32
    %22 = vector.broadcast %cst_17 : f32 to vector<64x256xf32>
    %23 = arith.maximumf %21, %22 : vector<64x256xf32>
    %24 = arith.truncf %23 : vector<64x256xf32> to vector<64x256xbf16>
    %c0_18 = arith.constant 0 : index
    %c0_19 = arith.constant 0 : index
    %25 = vector.load %arg8[%c0_18, %c0_19] : memref<128x64xbf16, #tpu.memory_space<vmem>>, vector<128x64xbf16>
    %cst_20 = arith.constant dense<0.000000e+00> : vector<128x256xf32>
    %26 = tpu.matmul %25, %24, %cst_20 {dimension_numbers = #tpu.dot_dimension_numbers<[1], [0], [0], [1], [0, 0, 1, 1], [], []>} : vector<128x64xbf16>, vector<64x256xbf16>, vector<128x256xf32> -> vector<128x256xf32>
    %c0_21 = arith.constant 0 : index
    %c0_22 = arith.constant 0 : index
    %27 = vector.load %arg9[%c0_21, %c0_22] : memref<128x1xf32, #tpu.memory_space<vmem>>, vector<128x1xf32>
    %28 = vector.broadcast %27 : vector<128x1xf32> to vector<128x256xf32>
    %29 = arith.addf %26, %28 : vector<128x256xf32>
    %cst_23 = arith.constant 0.000000e+00 : f32
    %30 = vector.broadcast %cst_23 : f32 to vector<128x256xf32>
    %31 = arith.maximumf %29, %30 : vector<128x256xf32>
    %32 = arith.truncf %31 : vector<128x256xf32> to vector<128x256xbf16>
    %c0_24 = arith.constant 0 : index
    %c0_25 = arith.constant 0 : index
    %33 = vector.load %arg10[%c0_24, %c0_25] : memref<8x128xbf16, #tpu.memory_space<vmem>>, vector<8x128xbf16>
    %cst_26 = arith.constant dense<0.000000e+00> : vector<8x256xf32>
    %34 = tpu.matmul %33, %32, %cst_26 {dimension_numbers = #tpu.dot_dimension_numbers<[1], [0], [0], [1], [0, 0, 1, 1], [], []>} : vector<8x128xbf16>, vector<128x256xbf16>, vector<8x256xf32> -> vector<8x256xf32>
    %c0_27 = arith.constant 0 : index
    %c0_28 = arith.constant 0 : index
    %35 = vector.load %arg11[%c0_27, %c0_28] : memref<8x1xf32, #tpu.memory_space<vmem>>, vector<8x1xf32>
    %36 = vector.broadcast %35 : vector<8x1xf32> to vector<8x256xf32>
    %37 = arith.addf %34, %36 : vector<8x256xf32>
    %c0_29 = arith.constant 0 : index
    %c0_30 = arith.constant 0 : index
    %38 = vector.load %arg12[%c0_29, %c0_30] : memref<8x256xf32, #tpu.memory_space<vmem>>, vector<8x256xf32>
    tpu.vector_store %arg12[%c0_29, %c0_30], %37 {strides = array<i32>} : memref<8x256xf32, #tpu.memory_space<vmem>>, vector<8x256xf32>,
    return
  }
  func.func @transform_0(%arg0: i32) -> (i32, i32) {
    %c0_i32 = arith.constant 0 : i32
    %c0_i32_0 = arith.constant 0 : i32
    return %c0_i32, %arg0 : i32, i32
  }
  func.func @transform_1(%arg0: i32) -> (i32, i32) {
    %c0_i32 = arith.constant 0 : i32
    %c0_i32_0 = arith.constant 0 : i32
    %c0_i32_1 = arith.constant 0 : i32
    return %c0_i32, %c0_i32_0 : i32, i32
  }
  func.func @transform_2(%arg0: i32) -> (i32, i32) {
    %c0_i32 = arith.constant 0 : i32
    %c0_i32_0 = arith.constant 0 : i32
    %c0_i32_1 = arith.constant 0 : i32
    return %c0_i32, %c0_i32_0 : i32, i32
  }
  func.func @transform_3(%arg0: i32) -> (i32, i32) {
    %c0_i32 = arith.constant 0 : i32
    %c0_i32_0 = arith.constant 0 : i32
    %c0_i32_1 = arith.constant 0 : i32
    return %c0_i32, %c0_i32_0 : i32, i32
  }
  func.func @transform_4(%arg0: i32) -> (i32, i32) {
    %c0_i32 = arith.constant 0 : i32
    %c0_i32_0 = arith.constant 0 : i32
    %c0_i32_1 = arith.constant 0 : i32
    return %c0_i32, %c0_i32_0 : i32, i32
  }
  func.func @transform_5(%arg0: i32) -> (i32, i32) {
    %c0_i32 = arith.constant 0 : i32
    %c0_i32_0 = arith.constant 0 : i32
    %c0_i32_1 = arith.constant 0 : i32
    return %c0_i32, %c0_i32_0 : i32, i32
  }
  func.func @transform_6(%arg0: i32) -> (i32, i32) {
    %c0_i32 = arith.constant 0 : i32
    %c0_i32_0 = arith.constant 0 : i32
    %c0_i32_1 = arith.constant 0 : i32
    return %c0_i32, %c0_i32_0 : i32, i32
  }
  func.func @transform_7(%arg0: i32) -> (i32, i32) {
    %c0_i32 = arith.constant 0 : i32
    %c0_i32_0 = arith.constant 0 : i32
    %c0_i32_1 = arith.constant 0 : i32
    return %c0_i32, %c0_i32_0 : i32, i32
  }
  func.func @transform_8(%arg0: i32) -> (i32, i32) {
    %c0_i32 = arith.constant 0 : i32
    %c0_i32_0 = arith.constant 0 : i32
    %c0_i32_1 = arith.constant 0 : i32
    return %c0_i32, %c0_i32_0 : i32, i32
  }
  func.func @transform_9(%arg0: i32) -> (i32, i32) {
    %c0_i32 = arith.constant 0 : i32
    %c0_i32_0 = arith.constant 0 : i32
    %c0_i32_1 = arith.constant 0 : i32
    return %c0_i32, %c0_i32_0 : i32, i32
  }
  func.func @transform_10(%arg0: i32) -> (i32, i32) {
    %c0_i32 = arith.constant 0 : i32
    %c0_i32_0 = arith.constant 0 : i32
    %c0_i32_1 = arith.constant 0 : i32
    return %c0_i32, %c0_i32_0 : i32, i32
  }
  func.func @transform_11(%arg0: i32) -> (i32, i32) {
    %c0_i32 = arith.constant 0 : i32
    %c0_i32_0 = arith.constant 0 : i32
    return %c0_i32, %arg0 : i32, i32
  }
}

</mosaic_0001>

<bundles_post_ra>
// kernel: autoencoder_forward.1
= control target key start
LH: loop header
LB: loop body
LE: loop exit
PB: predicated region body
PF: predicated region fallthrough
CT: control target
= control target key end

     0   :  { %s1714_s17 = smov 0   ;;  %s2127_s0 = inlined_call_operand.vmem [shape: bf16[8,512], index: 0, kind: input, shape index: {}]   ;;  %s2128_s1 = inlined_call_operand.vmem [shape: bf16[128,8], index: 1, kind: input, shape index: {}]   ;;  %s2129_s2 = inlined_call_operand.vmem [shape: f32[128,1], index: 2, kind: input, shape index: {}]   ;;  %s2130_s3 = inlined_call_operand.vmem [shape: bf16[64,128], index: 3, kind: input, shape index: {}]   ;;  %s2131_s4 = inlined_call_operand.vmem [shape: f32[64,1], index: 4, kind: input, shape index: {}]   ;;  %s2132_s5 = inlined_call_operand.vmem [shape: bf16[64,64], index: 5, kind: input, shape index: {}]   ;;  %s2133_s6 = inlined_call_operand.vmem [shape: f32[64,1], index: 6, kind: input, shape index: {}]   ;;  %s2134_s7 = inlined_call_operand.vmem [shape: bf16[128,64], index: 7, kind: input, shape index: {}]   ;;  %s2135_s8 = inlined_call_operand.vmem [shape: f32[128,1], index: 8, kind: input, shape index: {}]   ;;  %s2136_s9 = inlined_call_operand.vmem [shape: bf16[8,128], index: 9, kind: input, shape index: {}]   ;;  %s2137_s10 = inlined_call_operand.vmem [shape: f32[8,1], index: 10, kind: input, shape index: {}]   ;;  %s2138_s11 = inlined_call_operand.vmem [shape: f32[8,512], index: 11, kind: output, shape index: {}]  }
   0x1 LB: > { %s1548_s18 = sadd.s32 4294967295, %s1651_s17   ;;  %p1552_p0 = scmp.ge.s32.totalorder %s1651_s17, 1  ;;  %s1651_s17 = sphi %s1714_s17, %s21_s17  }
   0x2   : > { %p338_p1 = scmp.lt.s32.totalorder %s1651_s17, 3 }
   0x4   : > { %p339_p2 = pnand %p1552_p0, %p338_p1 }
   0x5   : > { %s1553_s19 = sshll.u32 (!%p339_p2), %s1548_s18, 1 }
   0x6   : > { %342 = sbr.rel (%p339_p2) target bundleno = 1265 (0x4f1), region = 64  ;;  %p379_p3 = scmp.lt.s32.totalorder (!%p339_p2), %s1553_s19, 3 }
   0xb   : > { %v422_v0 = vld [vmem:[%s2129_s2 + $0x70] sm:$0xff]  ;;  %v1653_v1 = vmov 0   ;;  %s2140_s19 = smov (!%p379_p3, %s1553_s19), 3  ;;  %v423_v2 = vld [vmem:[%s2129_s2 + $0x78] sm:$0xff]  ;;  %v420_v3 = vld [vmem:[%s2129_s2 + $0x60] sm:$0xff]  ;;  %vm574_vm0 = vcmask 1043456  }
   0xc   : > { %1617 = vset.pattern.permute.xlu0 %v1653_v1  ;;  %613 = vmatprep.mubr.bf16.mxu0 %v1653_v1  ;;  %s1554_s26 = sshll.u32 %s2140_s19, 2  ;;  %v421_v4 = vld [vmem:[%s2129_s2 + $0x68] sm:$0xff]  ;;  %v418_v8 = vld [vmem:[%s2129_s2 + $0x50] sm:$0xff]  ;;  %v419_v9 = vld [vmem:[%s2129_s2 + $0x58] sm:$0xff]  ;;  %vm549_vm1 = vcmask 64512   ;;  %vm995_vm2 = vcmask 523264  }
   0xd   : > { %653 = vmatprep.mubr.bf16.mxu1 %v1653_v1  ;;  %496 = vperm.xlu0 %1617, %v422_v0   ;;  %s382_s12 = scalar_lea.vmem %s2127_s0, %s1554_s26  ;;  %v1621_v11 = vld [vmem:[%s2128_s1] sm:$0xff]   ;;  %v417_v14 = vld [vmem:[%s2129_s2 + $0x48] sm:$0xff]  ;;  %v414_v15 = vld [vmem:[%s2129_s2 + $0x30] sm:$0xff]  ;;  %s1556_s18 = sshll.u32 %s2140_s19, 3 }
   0xe   : > { %1618 = vset.pattern.permute.xlu1 %v1653_v1  ;;  %v391_v5 = vld [vmem:[%s382_s12] sm:$0xff]  ;;  %v415_v16 = vld [vmem:[%s2129_s2 + $0x38] sm:$0xff]  ;;  %v1623_v17 = vld [vmem:[%s2128_s1 + $0x8] sm:$0xff]   ;;  %s388_s22 = scalar_lea.vmem %s2138_s11, %s1556_s18 }
   0xf   : > { %486 = vperm.xlu1 %1618, %v420_v3   ;;  %v1566_v6 = vcombine.high %v391_v5, %v391_v5  ;;  %v1565_v7 = vcombine.low %v391_v5, %v391_v5  ;;  %v1622_v12 = vld [vmem:[%s2128_s1 + $0x20] sm:$0xff]   ;;  %v1624_v18 = vld [vmem:[%s2128_s1 + $0x28] sm:$0xff]   ;;  %v1625_v21 = vld [vmem:[%s2128_s1 + $0x10] sm:$0xff]  }
  0x10   : > { %v416_v13 = vld [vmem:[%s2129_s2 + $0x40] sm:$0xff]  ;;  %v413_v20 = vld [vmem:[%s2129_s2 + $0x28] sm:$0xff]  ;;  %v1626_v22 = vld [vmem:[%s2128_s1 + $0x30] sm:$0xff]  }
  0x11   : > { %501 = vperm.xlu0 %1617, %v423_v2   ;;  %1567 = vmatprep.subr.msk.bf16.mxu0 %vm574_vm0, %v1566_v6  ;;  %v576_v10 = vsel %vm574_vm0, %v1565_v7, 0  ;;  %v412_v19 = vld [vmem:[%s2129_s2 + $0x20] sm:$0xff]  ;;  %v410_v23 = vld [vmem:[%s2129_s2 + $0x10] sm:$0xff]  ;;  %v411_v24 = vld [vmem:[%s2129_s2 + $0x18] sm:$0xff] }
  0x12   : > { %1606 = vmatprep.subr.msk.bf16.mxu1 %vm574_vm0, %v1566_v6  ;;  %596 = vmatpush1.bf16.msra.mxu0 %v576_v10  ;;  %v408_v25 = vld [vmem:[%s2129_s2] sm:$0xff]  ;;  %v409_v26 = vld [vmem:[%s2129_s2 + $0x8] sm:$0xff]  ;;  %v756_v27 = vld [vmem:[%s2131_s4 + $0x30] sm:$0xff] }
  0x13   : > { %491 = vperm.xlu1 %1618, %v421_v4   ;;  %1607 = vmatpush1.bf16.msra.mxu1 %v576_v10  ;;  %v757_v28 = vld [vmem:[%s2131_s4 + $0x38] sm:$0xff]  ;;  %v754_v31 = vld [vmem:[%s2131_s4 + $0x20] sm:$0xff]  ;;  %v755_v32 = vld [vmem:[%s2131_s4 + $0x28] sm:$0xff] }
  0x14   : > { %v1627_v29 = vld [vmem:[%s2128_s1 + $0x18] sm:$0xff]   ;;  %v752_v33 = vld [vmem:[%s2131_s4 + $0x10] sm:$0xff]  ;;  %v750_v35 = vld [vmem:[%s2131_s4] sm:$0xff] }
  0x15   : > { %476 = vperm.xlu0 %1617, %v418_v8   ;;  %1568 = vmatmul.mubr.msk.bf16.vlgmr.msra.gmra.mxu0 %vm549_vm1, %v1621_v11  ;;  %v1628_v30 = vld [vmem:[%s2128_s1 + $0x38] sm:$0xff]   ;;  %v751_v36 = vld [vmem:[%s2131_s4 + $0x8] sm:$0xff]  ;;  %v933_v37 = vld [vmem:[%s2133_s6 + $0x30] sm:$0xff] }
  0x16   : > { %1572 = vmatmul.mubr.msk.bf16.vlgmr.msra.gmra.mxu1 %vm549_vm1, %v1622_v12  ;;  %623 = vmatprep.mubr.bf16.mxu0 %v1653_v1  ;;  %v753_v34 = vld [vmem:[%s2131_s4 + $0x18] sm:$0xff]  ;;  %v931_v39 = vld [vmem:[%s2133_s6 + $0x20] sm:$0xff]  ;;  %v932_v40 = vld [vmem:[%s2133_s6 + $0x28] sm:$0xff] }
  0x17   : > { %481 = vperm.xlu1 %1618, %v419_v9   ;;  %663 = vmatprep.mubr.bf16.mxu1 %v1653_v1  ;;  %v934_v38 = vld [vmem:[%s2133_s6 + $0x38] sm:$0xff]  ;;  %v929_v41 = vld [vmem:[%s2133_s6 + $0x10] sm:$0xff]  ;;  %v927_v43 = vld [vmem:[%s2133_s6] sm:$0xff] }
  0x18   : > { %v930_v42 = vld [vmem:[%s2133_s6 + $0x18] sm:$0xff]  ;;  %v928_v44 = vld [vmem:[%s2133_s6 + $0x8] sm:$0xff]  ;;  %v1135_v45 = vld [vmem:[%s2135_s8 + $0x70] sm:$0xff] }
  0x19   : > { %466 = vperm.xlu0 %1617, %v416_v13   ;;  %v1136_v46 = vld [vmem:[%s2135_s8 + $0x78] sm:$0xff]  ;;  %v1133_v47 = vld [vmem:[%s2135_s8 + $0x60] sm:$0xff]  ;;  %v1134_v48 = vld [vmem:[%s2135_s8 + $0x68] sm:$0xff] }
  0x1a   : > { %v1131_v49 = vld [vmem:[%s2135_s8 + $0x50] sm:$0xff]  ;;  %v1132_v50 = vld [vmem:[%s2135_s8 + $0x58] sm:$0xff]  ;;  %v1129_v51 = vld [vmem:[%s2135_s8 + $0x40] sm:$0xff] }
  0x1b   : > { %471 = vperm.xlu1 %1618, %v417_v14   ;;  %v1130_v52 = vld [vmem:[%s2135_s8 + $0x48] sm:$0xff]  ;;  %v1127_v53 = vld [vmem:[%s2135_s8 + $0x30] sm:$0xff]  ;;  %v1128_v54 = vld [vmem:[%s2135_s8 + $0x38] sm:$0xff] }
  0x1c   : > { %v1125_v55 = vld [vmem:[%s2135_s8 + $0x20] sm:$0xff]  ;;  %v1126_v56 = vld [vmem:[%s2135_s8 + $0x28] sm:$0xff]  ;;  %v1123_v57 = vld [vmem:[%s2135_s8 + $0x10] sm:$0xff] }
  0x1d   : > { %456 = vperm.xlu0 %1617, %v414_v15   ;;  %1569 = vmatmul.mubr.msk.bf16.gmra.mxu0 %vm549_vm1, %v1623_v17  ;;  %v1124_v58 = vld [vmem:[%s2135_s8 + $0x18] sm:$0xff]  ;;  %v1121_v59 = vld [vmem:[%s2135_s8] sm:$0xff]  ;;  %v1122_v60 = vld [vmem:[%s2135_s8 + $0x8] sm:$0xff] }
  0x1e   : > { %1573 = vmatmul.mubr.msk.bf16.gmra.mxu1 %vm549_vm1, %v1624_v18  ;;  %633 = vmatprep.mubr.bf16.mxu0 %v1653_v1  ;;  %v1443_v61 = vld [vmem:[%s2137_s10] sm:$0xff] }
  0x1f   : > { %461 = vperm.xlu1 %1618, %v415_v16   ;;  %673 = vmatprep.mubr.bf16.mxu1 %v1653_v1 }
  0x21   : > { %446 = vperm.xlu0 %1617, %v412_v19  }
  0x23   : > { %451 = vperm.xlu1 %1618, %v413_v20  }
  0x25   : > { %436 = vperm.xlu0 %1617, %v410_v23   ;;  %1570 = vmatmul.mubr.msk.bf16.gmra.mxu0 %vm549_vm1, %v1625_v21 }
  0x26   : > { %1574 = vmatmul.mubr.msk.bf16.gmra.mxu1 %vm549_vm1, %v1626_v22  ;;  %643 = vmatprep.mubr.bf16.mxu0 %v1653_v1 }
  0x27   : > { %441 = vperm.xlu1 %1618, %v411_v24   ;;  %683 = vmatprep.mubr.bf16.mxu1 %v1653_v1 }
  0x29   : > { %426 = vperm.xlu0 %1617, %v408_v25  }
  0x2b   : > { %431 = vperm.xlu1 %1618, %v409_v26  }
  0x2d   : > { %790 = vperm.xlu0 %1617, %v756_v27   ;;  %1571 = vmatmul.mubr.msk.bf16.gmra.mxu0 %vm549_vm1, %v1627_v29 }
  0x2e   : > { %1575 = vmatmul.mubr.msk.bf16.gmra.mxu1 %vm549_vm1, %v1628_v30  ;;  %1313 = vmatprep.mubr.bf16.mxu0 %v1653_v1 }
  0x2f   : > { %795 = vperm.xlu1 %1618, %v757_v28   ;;  %854 = vmatprep.mubr.bf16.mxu1 %v1653_v1 }
  0x31   : > { %780 = vperm.xlu0 %1617, %v754_v31  }
  0x33   : > { %785 = vperm.xlu1 %1618, %v755_v32  }
  0x35   : > { %770 = vperm.xlu0 %1617, %v752_v33  }
  0x37   : > { %775 = vperm.xlu1 %1618, %v753_v34  }
  0x39   : > { %760 = vperm.xlu0 %1617, %v750_v35  }
  0x3b   : > { %765 = vperm.xlu1 %1618, %v751_v36  }
  0x3d   : > { %967 = vperm.xlu0 %1617, %v933_v37  }
  0x3f   : > { %972 = vperm.xlu1 %1618, %v934_v38  }
  0x41   : > { %957 = vperm.xlu0 %1617, %v931_v39  }
  0x43   : > { %962 = vperm.xlu1 %1618, %v932_v40  }
  0x45   : > { %947 = vperm.xlu0 %1617, %v929_v41  }
  0x47   : > { %952 = vperm.xlu1 %1618, %v930_v42  }
  0x49   : > { %937 = vperm.xlu0 %1617, %v927_v43  }
  0x4b   : > { %942 = vperm.xlu1 %1618, %v928_v44  }
  0x4d   : > { %1209 = vperm.xlu0 %1617, %v1135_v45  }
  0x4f   : > { %1214 = vperm.xlu1 %1618, %v1136_v46  }
  0x51   : > { %1199 = vperm.xlu0 %1617, %v1133_v47  }
  0x53   : > { %1204 = vperm.xlu1 %1618, %v1134_v48  }
  0x55   : > { %1189 = vperm.xlu0 %1617, %v1131_v49  }
  0x57   : > { %1194 = vperm.xlu1 %1618, %v1132_v50  }
  0x59   : > { %1179 = vperm.xlu0 %1617, %v1129_v51  }
  0x5b   : > { %1184 = vperm.xlu1 %1618, %v1130_v52  }
  0x5d   : > { %1169 = vperm.xlu0 %1617, %v1127_v53  }
  0x5f   : > { %1174 = vperm.xlu1 %1618, %v1128_v54  }
  0x61   : > { %1159 = vperm.xlu0 %1617, %v1125_v55  }
  0x63   : > { %1164 = vperm.xlu1 %1618, %v1126_v56  }
  0x65   : > { %1149 = vperm.xlu0 %1617, %v1123_v57  }
  0x67   : > { %1154 = vperm.xlu1 %1618, %v1124_v58  }
  0x69   : > { %1139 = vperm.xlu0 %1617, %v1121_v59  }
  0x6b   : > { %1144 = vperm.xlu1 %1618, %v1122_v60  }
  0x6d   : > { %1446 = vperm.xlu0 %1617, %v1443_v61  }
  0x88   : > { %v497_v7 = vpop.permute.xlu0 %496 }
  0x8a   : > { %v487_v10 = vpop.permute.xlu1 %486 }
  0x8c   : > { %v502_v15 = vpop.permute.xlu0 %501 }
  0x8e   : > { %v492_v18 = vpop.permute.xlu1 %491 }
  0x90   : > { %v477_v23 = vpop.permute.xlu0 %476 }
  0x92   : > { %v482_v26 = vpop.permute.xlu1 %481 }
  0x94   : > { %v467_v30 = vpop.permute.xlu0 %466 }
  0x96   : > { %v472_v33 = vpop.permute.xlu1 %471 }
  0x98   : > { %v457_v43 = vpop.permute.xlu0 %456 }
  0x9a   : > { %v462_v50 = vpop.permute.xlu1 %461 }
  0xd5   : > { %v1919_v62 = vpop.f32.mrf.mxu0 }
  0xd6   : > { %v1921_v63 = vpop.f32.mrf.mxu1 }
  0xd7   : > { %v1923_v0 = vpop.f32.mrf.mxu0 }
  0xd8   : > { %v1925_v2 = vpop.f32.mrf.mxu1 }
  0xd9   : > { %v1927_v3 = vpop.f32.mrf.mxu0 }
  0xda   : > { %v1929_v4 = vpop.f32.mrf.mxu1 }
  0xdb   : > { %v1931_v5 = vpop.f32.mrf.mxu0 }
  0xdc   : > { %v661_v6 = vpop.f32.mrf.mxu1 }
  0xdd   : > { %v1933_v8 = vpop.f32.mrf.mxu0  ;;  %v662_v60 = vadd.f32 %v661_v6, %v472_v33 }
  0xde   : > { %v665_v9 = vpop.f32.mrf.mxu1 }
  0xdf   : > { %v1935_v11 = vpop.f32.mrf.mxu0  ;;  %v713_v6 = vmax.f32 %v662_v60, 0.0 }
  0xe0   : > { %v667_v12 = vpop.f32.mrf.mxu1 }
  0xe1   : > { %v1937_v13 = vpop.f32.mrf.mxu0  ;;  %v668_v54 = vadd.f32 %v667_v12, %v477_v23  ;;  %v452_v12 = vpop.permute.xlu1 %451 }
  0xe2   : > { %v669_v14 = vpop.f32.mrf.mxu1 }
  0xe3   : > { %v1939_v16 = vpop.f32.mrf.mxu0  ;;  %v670_v57 = vadd.f32 %v669_v14, %v482_v26  ;;  %v656_v14 = vadd.f32 %v1921_v63, %v467_v30 }
  0xe4   : > { %v671_v17 = vpop.f32.mrf.mxu1 }
  0xe5   : > { %v1941_v19 = vpop.f32.mrf.mxu0  ;;  %v672_v46 = vadd.f32 %v671_v17, %v482_v26  ;;  %v716_v26 = vmax.f32 %v670_v57, 0.0 }
  0xe6   : > { %v675_v20 = vpop.f32.mrf.mxu1 }
  0xe7   : > { %v1943_v21 = vpop.f32.mrf.mxu0  ;;  %v676_v51 = vadd.f32 %v675_v20, %v487_v10  ;;  %v717_v61 = vmax.f32 %v672_v46, 0.0  ;;  %v715_v20 = vmax.f32 %v668_v54, 0.0 }
  0xe8   : > { %v677_v22 = vpop.f32.mrf.mxu1 }
  0xe9   : > { %v1945_v24 = vpop.f32.mrf.mxu0  ;;  %v678_v41 = vadd.f32 %v677_v22, %v487_v10  ;;  %v718_v17 = vmax.f32 %v676_v51, 0.0  ;;  %v660_v10 = vadd.f32 %v1929_v4, %v472_v33 }
  0xea   : > { %v679_v25 = vpop.f32.mrf.mxu1  ;;  %v640_v46 = vadd.f32 %v1945_v24, %v452_v12 }
  0xeb   : > { %v1947_v27 = vpop.f32.mrf.mxu0  ;;  %v680_v44 = vadd.f32 %v679_v25, %v492_v18  ;;  %v719_v55 = vmax.f32 %v678_v41, 0.0  ;;  %v658_v25 = vadd.f32 %v1925_v2, %v467_v30  ;;  %v710_v2 = vmax.f32 %v656_v14, 0.0 }
  0xec   : > { %v681_v28 = vpop.f32.mrf.mxu1  ;;  %v642_v63 = vadd.f32 %v1947_v27, %v452_v12 }
  0xed   : > { %v1949_v31 = vpop.f32.mrf.mxu0  ;;  %v682_v35 = vadd.f32 %v681_v28, %v492_v18  ;;  %v720_v58 = vmax.f32 %v680_v44, 0.0  ;;  %v666_v18 = vadd.f32 %v665_v9, %v477_v23  ;;  %v711_v9 = vmax.f32 %v658_v25, 0.0  ;;  %v1632_v25 = vld [vmem:[%s2130_s3 + $0x18] sm:$0xff]  }
  0xee   : > { %v685_v29 = vpop.f32.mrf.mxu1  ;;  %v712_v23 = vmax.f32 %v660_v10, 0.0  ;;  %v646_v41 = vadd.f32 %v1949_v31, %v457_v43 }
  0xef   : > { %v686_v38 = vadd.f32 %v685_v29, %v497_v7  ;;  %v647_v39 = vpop.f32.mrf.mxu0  ;;  %v721_v47 = vmax.f32 %v682_v35, 0.0  ;;  %v738_v28 = vpack.c.bf16 %v720_v58, %v718_v17  ;;  %v737_v29 = vpack.c.bf16 %v717_v61, %v715_v20 }
  0xf0   : > { %v687_v32 = vpop.f32.mrf.mxu1  ;;  %v648_v35 = vadd.f32 %v647_v39, %v457_v43  ;;  %v735_v33 = vpack.c.bf16 %v713_v6, %v711_v9  ;;  %v706_v51 = vmax.f32 %v646_v41, 0.0 }
  0xf1   : > { %v688_v36 = vadd.f32 %v687_v32, %v497_v7  ;;  %v722_v52 = vmax.f32 %v686_v38, 0.0  ;;  %v649_v53 = vpop.f32.mrf.mxu0  ;;  %v739_v7 = vpack.c.bf16 %v721_v47, %v719_v55 }
  0xf2   : > { %v689_v34 = vpop.f32.mrf.mxu1  ;;  %v650_v4 = vadd.f32 %v649_v53, %v462_v50  ;;  %v707_v44 = vmax.f32 %v648_v35, 0.0  ;;  %v704_v53 = vmax.f32 %v640_v46, 0.0 }
  0xf3   : > { %v690_v37 = vadd.f32 %v689_v34, %v502_v15  ;;  %v723_v48 = vmax.f32 %v688_v36, 0.0  ;;  %v651_v22 = vpop.f32.mrf.mxu0  ;;  %v714_v34 = vmax.f32 %v666_v18, 0.0 }
  0xf4   : > { %v691_v40 = vpop.f32.mrf.mxu1  ;;  %v652_v32 = vadd.f32 %v651_v22, %v462_v50  ;;  %v708_v47 = vmax.f32 %v650_v4, 0.0  ;;  %v1631_v22 = vld [vmem:[%s2130_s3 + $0x10] sm:$0xff]  }
  0xf5   : > { %v692_v42 = vadd.f32 %v691_v40, %v502_v15  ;;  %v724_v45 = vmax.f32 %v690_v37, 0.0  ;;  %v447_v15 = vpop.permute.xlu0 %446  ;;  %v736_v37 = vpack.c.bf16 %v716_v26, %v714_v34  ;;  %v442_v40 = vpop.permute.xlu1 %441 }
  0xf6   : > { %v638_v38 = vadd.f32 %v1943_v21, %v447_v15  ;;  %v709_v30 = vmax.f32 %v652_v32, 0.0  ;;  %v732_v24 = vpack.c.bf16 %v708_v47, %v706_v51 }
  0xf7   : > { %v725_v49 = vmax.f32 %v692_v42, 0.0  ;;  %v740_v59 = vpack.c.bf16 %v724_v45, %v722_v52  ;;  %v734_v42 = vpack.c.bf16 %v712_v23, %v710_v2  ;;  %v636_v45 = vadd.f32 %v1941_v19, %v447_v15 }
  0xf8   : > { %v703_v21 = vmax.f32 %v638_v38, 0.0  ;;  %v733_v27 = vpack.c.bf16 %v709_v30, %v707_v44 }
  0xf9   : > { %v741_v56 = vpack.c.bf16 %v725_v49, %v723_v48  ;;  %v437_v36 = vpop.permute.xlu0 %436  ;;  %v632_v48 = vadd.f32 %v1939_v16, %v442_v40  ;;  %v705_v49 = vmax.f32 %v642_v63, 0.0  ;;  %v432_v52 = vpop.permute.xlu1 %431  ;;  %v702_v19 = vmax.f32 %v636_v45, 0.0 }
  0xfa   : > { %v628_v39 = vadd.f32 %v1935_v11, %v437_v36  ;;  %v626_v43 = vadd.f32 %v1933_v8, %v437_v36  ;;  %v630_v11 = vadd.f32 %v1937_v13, %v442_v40  ;;  %v622_v54 = vadd.f32 %v1931_v5, %v432_v52 }
  0xfb   : > { %822 = vmatprep.subr.bf16.mxu1 %v741_v56  ;;  %v701_v55 = vmax.f32 %v632_v48, 0.0  ;;  %v731_v56 = vpack.c.bf16 %v705_v49, %v703_v21 }
  0xfc   : > { %823 = vmatpush1.bf16.msra.mxu1 %v740_v59  ;;  %v699_v16 = vmax.f32 %v628_v39, 0.0  ;;  %v698_v58 = vmax.f32 %v626_v43, 0.0  ;;  %v700_v8 = vmax.f32 %v630_v11, 0.0  ;;  %v730_v59 = vpack.c.bf16 %v704_v53, %v702_v19 }
  0xfd   : > { %824 = vmatprep.subr.bf16.mxu1 %v739_v7  ;;  %v427_v50 = vpop.permute.xlu0 %426  ;;  %v697_v61 = vmax.f32 %v622_v54, 0.0  ;;  %v796_v34 = vpop.permute.xlu1 %795 }
  0xfe   : > { %v618_v31 = vadd.f32 %v1923_v0, %v427_v50  ;;  %v616_v57 = vadd.f32 %v1919_v62, %v427_v50  ;;  %v620_v0 = vadd.f32 %v1927_v3, %v432_v52  ;;  %v729_v13 = vpack.c.bf16 %v701_v55, %v699_v16  ;;  %v1629_v62 = vld [vmem:[%s2130_s3] sm:$0xff]   ;;  %v1630_v3 = vld [vmem:[%s2130_s3 + $0x8] sm:$0xff]  }
  0xff   : > { %v728_v5 = vpack.c.bf16 %v700_v8, %v698_v58 }
 0x100   : > { %825 = vmatpush1.bf16.msra.mxu1 %v738_v28  ;;  %v695_v60 = vmax.f32 %v618_v31, 0.0  ;;  %v694_v7 = vmax.f32 %v616_v57, 0.0  ;;  %v696_v15 = vmax.f32 %v620_v0, 0.0 }
 0x101   : > { %826 = vmatprep.subr.bf16.mxu1 %v737_v29  ;;  %v791_v23 = vpop.permute.xlu0 %790  ;;  %v786_v2 = vpop.permute.xlu1 %785 }
 0x102   : > { %v727_v18 = vpack.c.bf16 %v697_v61, %v695_v60  ;;  %v726_v17 = vpack.c.bf16 %v696_v15, %v694_v7 }
 0x104   : > { %827 = vmatpush1.bf16.msra.mxu1 %v736_v37 }
 0x105   : > { %828 = vmatprep.subr.bf16.mxu1 %v735_v33  ;;  %v781_v4 = vpop.permute.xlu0 %780  ;;  %v776_v41 = vpop.permute.xlu1 %775 }
 0x108   : > { %829 = vmatpush1.bf16.msra.mxu1 %v734_v42 }
 0x109   : > { %830 = vmatprep.subr.bf16.mxu1 %v733_v27  ;;  %v771_v46 = vpop.permute.xlu0 %770  ;;  %v766_v19 = vpop.permute.xlu1 %765 }
 0x10c   : > { %831 = vmatpush1.bf16.msra.mxu1 %v732_v24 }
 0x10d   : > { %832 = vmatprep.subr.bf16.mxu1 %v731_v56  ;;  %v761_v57 = vpop.permute.xlu0 %760 }
 0x110   : > { %833 = vmatpush1.bf16.msra.mxu1 %v730_v59 }
 0x111   : > { %834 = vmatprep.subr.bf16.mxu1 %v729_v13 }
 0x114   : > { %835 = vmatpush1.bf16.msra.mxu1 %v728_v5 }
 0x115   : > { %836 = vmatprep.subr.bf16.mxu1 %v727_v18 }
 0x118   : > { %837 = vmatpush1.bf16.msra.mxu1 %v726_v17 }
 0x11b   : > { %855 = vmatmul.mubr.bf16.vlgmr.msra.gmra.mxu1 %v1629_v62 }
 0x11c   : > { %864 = vmatprep.mubr.bf16.mxu1 %v1653_v1 }
 0x123   : > { %865 = vmatmul.mubr.bf16.gmra.mxu1 %v1630_v3 }
 0x124   : > { %874 = vmatprep.mubr.bf16.mxu1 %v1653_v1 }
 0x12b   : > { %875 = vmatmul.mubr.bf16.gmra.mxu1 %v1631_v22 }
 0x12c   : > { %884 = vmatprep.mubr.bf16.mxu1 %v1653_v1 }
 0x133   : > { %885 = vmatmul.mubr.bf16.gmra.mxu1 %v1632_v25 }
 0x134   : > { %1040 = vmatprep.mubr.bf16.mxu1 %v1653_v1 }
 0x1db   : > { %v856_v10 = vpop.f32.mrf.mxu1 }
 0x1dc   : > { %v857_v5 = vadd.f32 %v856_v10, %v761_v57  ;;  %v1634_v10 = vld [vmem:[%s2132_s5 + $0x8] sm:$0xff]  }
 0x1dd   : > { %v858_v20 = vpop.f32.mrf.mxu1 }
 0x1de   : > { %v859_v8 = vadd.f32 %v858_v20, %v761_v57  ;;  %v895_v25 = vmax.f32 %v857_v5, 0.0  ;;  %v1633_v20 = vld [vmem:[%s2132_s5] sm:$0xff]  }
 0x1df   : > { %v860_v12 = vpop.f32.mrf.mxu1 }
 0x1e0   : > { %v861_v60 = vadd.f32 %v860_v12, %v766_v19  ;;  %v896_v17 = vmax.f32 %v859_v8, 0.0  ;;  %v1635_v12 = vld [vmem:[%s2132_s5 + $0x10] sm:$0xff]  }
 0x1e1   : > { %v862_v14 = vpop.f32.mrf.mxu1 }
 0x1e2   : > { %v863_v16 = vadd.f32 %v862_v14, %v766_v19  ;;  %v897_v62 = vmax.f32 %v861_v60, 0.0 }
 0x1e3   : > { %v866_v26 = vpop.f32.mrf.mxu1 }
 0x1e4   : > { %v867_v0 = vadd.f32 %v866_v26, %v771_v46  ;;  %v898_v7 = vmax.f32 %v863_v16, 0.0  ;;  %v911_v14 = vpack.c.bf16 %v897_v62, %v895_v25  ;;  %v1636_v26 = vld [vmem:[%s2132_s5 + $0x18] sm:$0xff]  }
 0x1e5   : > { %v868_v28 = vpop.f32.mrf.mxu1 }
 0x1e6   : > { %v869_v43 = vadd.f32 %v868_v28, %v771_v46  ;;  %v899_v18 = vmax.f32 %v867_v0, 0.0  ;;  %v912_v22 = vpack.c.bf16 %v898_v7, %v896_v17 }
 0x1e7   : > { %v870_v6 = vpop.f32.mrf.mxu1 }
 0x1e8   : > { %v871_v53 = vadd.f32 %v870_v6, %v776_v41  ;;  %v900_v59 = vmax.f32 %v869_v43, 0.0 }
 0x1e9   : > { %v872_v29 = vpop.f32.mrf.mxu1 }
 0x1ea   : > { %v873_v21 = vadd.f32 %v872_v29, %v776_v41  ;;  %v901_v61 = vmax.f32 %v871_v53, 0.0 }
 0x1eb   : > { %v876_v32 = vpop.f32.mrf.mxu1 }
 0x1ec   : > { %v877_v51 = vadd.f32 %v876_v32, %v781_v4  ;;  %v902_v55 = vmax.f32 %v873_v21, 0.0  ;;  %v913_v3 = vpack.c.bf16 %v901_v61, %v899_v18 }
 0x1ed   : > { %v878_v9 = vpop.f32.mrf.mxu1 }
 0x1ee   : > { %v879_v39 = vadd.f32 %v878_v9, %v781_v4  ;;  %v903_v58 = vmax.f32 %v877_v51, 0.0  ;;  %v914_v15 = vpack.c.bf16 %v902_v55, %v900_v59  ;;  %v968_v4 = vpop.permute.xlu0 %967 }
 0x1ef   : > { %v880_v35 = vpop.f32.mrf.mxu1 }
 0x1f0   : > { %v881_v47 = vadd.f32 %v880_v35, %v786_v2  ;;  %v904_v52 = vmax.f32 %v879_v39, 0.0 }
 0x1f1   : > { %v882_v36 = vpop.f32.mrf.mxu1 }
 0x1f2   : > { %v883_v63 = vadd.f32 %v882_v36, %v786_v2  ;;  %v905_v24 = vmax.f32 %v881_v47, 0.0  ;;  %v973_v2 = vpop.permute.xlu1 %972 }
 0x1f3   : > { %v886_v37 = vpop.f32.mrf.mxu1 }
 0x1f4   : > { %v887_v42 = vadd.f32 %v886_v37, %v791_v23  ;;  %v906_v49 = vmax.f32 %v883_v63, 0.0  ;;  %v915_v13 = vpack.c.bf16 %v905_v24, %v903_v58 }
 0x1f5   : > { %v888_v33 = vpop.f32.mrf.mxu1 }
 0x1f6   : > { %v889_v30 = vadd.f32 %v888_v33, %v791_v23  ;;  %v907_v31 = vmax.f32 %v887_v42, 0.0  ;;  %v916_v56 = vpack.c.bf16 %v906_v49, %v904_v52  ;;  %v963_v63 = vpop.permute.xlu1 %962 }
 0x1f7   : > { %v890_v38 = vpop.f32.mrf.mxu1 }
 0x1f8   : > { %v891_v40 = vadd.f32 %v890_v38, %v796_v34  ;;  %v908_v27 = vmax.f32 %v889_v30, 0.0 }
 0x1f9   : > { %v892_v44 = vpop.f32.mrf.mxu1 }
 0x1fa   : > { %v893_v45 = vadd.f32 %v892_v44, %v796_v34  ;;  %v909_v48 = vmax.f32 %v891_v40, 0.0  ;;  %v958_v40 = vpop.permute.xlu0 %957  ;;  %v953_v46 = vpop.permute.xlu1 %952 }
 0x1fc   : > { %v910_v50 = vmax.f32 %v893_v45, 0.0  ;;  %v917_v54 = vpack.c.bf16 %v909_v48, %v907_v31 }
 0x1fe   : > { %v918_v11 = vpack.c.bf16 %v910_v50, %v908_v27  ;;  %v948_v27 = vpop.permute.xlu0 %947  ;;  %v943_v55 = vpop.permute.xlu1 %942 }
 0x200   : > { %1016 = vmatprep.subr.bf16.mxu1 %v918_v11 }
 0x201   : > { %1017 = vmatpush1.bf16.msra.mxu1 %v917_v54 }
 0x202   : > { %1018 = vmatprep.subr.bf16.mxu1 %v916_v56  ;;  %v938_v60 = vpop.permute.xlu0 %937 }
 0x205   : > { %1019 = vmatpush1.bf16.msra.mxu1 %v915_v13 }
 0x206   : > { %1020 = vmatprep.subr.bf16.mxu1 %v914_v15 }
 0x209   : > { %1021 = vmatpush1.bf16.msra.mxu1 %v913_v3 }
 0x20a   : > { %1022 = vmatprep.subr.bf16.mxu1 %v912_v22 }
 0x20d   : > { %1023 = vmatpush1.bf16.msra.mxu1 %v911_v14 }
 0x210   : > { %1584 = vmatmul.mubr.msk.bf16.vlgmr.msra.gmra.mxu1 %vm995_vm2, %v1633_v20 }
 0x211   : > { %1050 = vmatprep.mubr.bf16.mxu1 %v1653_v1 }
 0x218   : > { %1585 = vmatmul.mubr.msk.bf16.gmra.mxu1 %vm995_vm2, %v1634_v10 }
 0x219   : > { %1060 = vmatprep.mubr.bf16.mxu1 %v1653_v1 }
 0x220   : > { %1586 = vmatmul.mubr.msk.bf16.gmra.mxu1 %vm995_vm2, %v1635_v12 }
 0x221   : > { %1070 = vmatprep.mubr.bf16.mxu1 %v1653_v1 }
 0x228   : > { %1587 = vmatmul.mubr.msk.bf16.gmra.mxu1 %vm995_vm2, %v1636_v26 }
 0x229   : > { %1481 = vmatprep.mubr.bf16.mxu1 %v1653_v1 }
 0x2d0   : > { %v1042_v28 = vpop.f32.mrf.mxu1 }
 0x2d1   : > { %v1043_v22 = vadd.f32 %v1042_v28, %v938_v60  ;;  %v1638_v28 = vld [vmem:[%s2134_s7 + $0x8] sm:$0xff]  }
 0x2d2   : > { %v1044_v6 = vpop.f32.mrf.mxu1 }
 0x2d3   : > { %v1045_v7 = vadd.f32 %v1044_v6, %v938_v60  ;;  %v1081_v26 = vmax.f32 %v1043_v22, 0.0  ;;  %v1637_v6 = vld [vmem:[%s2134_s7] sm:$0xff]  }
 0x2d4   : > { %v1046_v29 = vpop.f32.mrf.mxu1 }
 0x2d5   : > { %v1047_v5 = vadd.f32 %v1046_v29, %v943_v55  ;;  %v1082_v14 = vmax.f32 %v1045_v7, 0.0  ;;  %v1639_v29 = vld [vmem:[%s2134_s7 + $0x10] sm:$0xff]  }
 0x2d6   : > { %v1048_v32 = vpop.f32.mrf.mxu1 }
 0x2d7   : > { %v1049_v58 = vadd.f32 %v1048_v32, %v943_v55  ;;  %v1083_v20 = vmax.f32 %v1047_v5, 0.0 }
 0x2d8   : > { %v1052_v34 = vpop.f32.mrf.mxu1 }
 0x2d9   : > { %v1053_v61 = vadd.f32 %v1052_v34, %v948_v27  ;;  %v1084_v62 = vmax.f32 %v1049_v58, 0.0  ;;  %v1097_v32 = vpack.c.bf16 %v1083_v20, %v1081_v26  ;;  %v1640_v34 = vld [vmem:[%s2134_s7 + $0x18] sm:$0xff]  }
 0x2da   : > { %v1054_v9 = vpop.f32.mrf.mxu1 }
 0x2db   : > { %v1055_v24 = vadd.f32 %v1054_v9, %v948_v27  ;;  %v1085_v25 = vmax.f32 %v1053_v61, 0.0  ;;  %v1098_v12 = vpack.c.bf16 %v1084_v62, %v1082_v14  ;;  %v1641_v9 = vld [vmem:[%s2134_s7 + $0x20] sm:$0xff]  }
 0x2dc   : > { %v1056_v23 = vpop.f32.mrf.mxu1 }
 0x2dd   : > { %v1057_v56 = vadd.f32 %v1056_v23, %v953_v46  ;;  %v1086_v15 = vmax.f32 %v1055_v24, 0.0  ;;  %v1642_v23 = vld [vmem:[%s2134_s7 + $0x28] sm:$0xff]  }
 0x2de   : > { %v1058_v35 = vpop.f32.mrf.mxu1 }
 0x2df   : > { %v1059_v31 = vadd.f32 %v1058_v35, %v953_v46  ;;  %v1087_v18 = vmax.f32 %v1057_v56, 0.0  ;;  %v1643_v35 = vld [vmem:[%s2134_s7 + $0x30] sm:$0xff]  }
 0x2e0   : > { %v1062_v36 = vpop.f32.mrf.mxu1 }
 0x2e1   : > { %v1063_v19 = vadd.f32 %v1062_v36, %v958_v40  ;;  %v1088_v8 = vmax.f32 %v1059_v31, 0.0  ;;  %v1099_v10 = vpack.c.bf16 %v1087_v18, %v1085_v25  ;;  %v1644_v36 = vld [vmem:[%s2134_s7 + $0x38] sm:$0xff]  }
 0x2e2   : > { %v1064_v37 = vpop.f32.mrf.mxu1 }
 0x2e3   : > { %v1065_v21 = vadd.f32 %v1064_v37, %v958_v40  ;;  %v1089_v13 = vmax.f32 %v1063_v19, 0.0  ;;  %v1100_v3 = vpack.c.bf16 %v1088_v8, %v1086_v15  ;;  %v2044_v37 = vpop.permute.xlu1 %1214 }
 0x2e4   : > { %v1066_v33 = vpop.f32.mrf.mxu1 }
 0x2e5   : > { %v1067_v50 = vadd.f32 %v1066_v33, %v963_v63  ;;  %v1090_v54 = vmax.f32 %v1065_v21, 0.0 }
 0x2e6   : > { %v1068_v38 = vpop.f32.mrf.mxu1 }
 0x2e7   : > { %v1069_v44 = vadd.f32 %v1068_v38, %v963_v63  ;;  %v1091_v57 = vmax.f32 %v1067_v50, 0.0  ;;  %v2048_v33 = vpop.permute.xlu1 %1204 }
 0x2e8   : > { %v1072_v30 = vpop.f32.mrf.mxu1 }
 0x2e9   : > { %v1073_v47 = vadd.f32 %v1072_v30, %v968_v4  ;;  %v1092_v43 = vmax.f32 %v1069_v44, 0.0  ;;  %v1101_v17 = vpack.c.bf16 %v1091_v57, %v1089_v13 }
 0x2ea   : > { %v1074_v41 = vpop.f32.mrf.mxu1 }
 0x2eb   : > { %v1075_v39 = vadd.f32 %v1074_v41, %v968_v4  ;;  %v1093_v53 = vmax.f32 %v1073_v47, 0.0  ;;  %v1102_v59 = vpack.c.bf16 %v1092_v43, %v1090_v54  ;;  %v2052_v63 = vpop.permute.xlu1 %1194 }
 0x2ec   : > { %v1076_v42 = vpop.f32.mrf.mxu1 }
 0x2ed   : > { %v1077_v45 = vadd.f32 %v1076_v42, %v973_v2  ;;  %v1094_v52 = vmax.f32 %v1075_v39, 0.0 }
 0x2ee   : > { %v1078_v48 = vpop.f32.mrf.mxu1 }
 0x2ef   : > { %v1079_v49 = vadd.f32 %v1078_v48, %v973_v2  ;;  %v1095_v51 = vmax.f32 %v1077_v45, 0.0  ;;  %v2042_v2 = vpop.permute.xlu0 %1209 }
 0x2f1   : > { %v1096_v11 = vmax.f32 %v1079_v49, 0.0  ;;  %v1103_v0 = vpack.c.bf16 %v1095_v51, %v1093_v53 }
 0x2f3   : > { %v1104_v16 = vpack.c.bf16 %v1096_v11, %v1094_v52  ;;  %v2046_v4 = vpop.permute.xlu0 %1199 }
 0x2f5   : > { %1289 = vmatprep.subr.bf16.mxu0 %v1104_v16 }
 0x2f6   : > { %1290 = vmatpush1.bf16.msra.mxu0 %v1103_v0 }
 0x2f7   : > { %1291 = vmatprep.subr.bf16.mxu0 %v1102_v59  ;;  %v2050_v38 = vpop.permute.xlu0 %1189 }
 0x2fa   : > { %1292 = vmatpush1.bf16.msra.mxu0 %v1101_v17 }
 0x2fb   : > { %1293 = vmatprep.subr.bf16.mxu0 %v1100_v3  ;;  %v2054_v30 = vpop.permute.xlu0 %1179 }
 0x2fe   : > { %1294 = vmatpush1.bf16.msra.mxu0 %v1099_v10 }
 0x2ff   : > { %1295 = vmatprep.subr.bf16.mxu0 %v1098_v12  ;;  %v2058_v40 = vpop.permute.xlu0 %1169 }
 0x302   : > { %1296 = vmatpush1.bf16.msra.mxu0 %v1097_v32 }
 0x303   : > { %v2062_v42 = vpop.permute.xlu0 %1159 }
 0x305   : > { %1596 = vmatmul.mubr.msk.bf16.vlgmr.msra.gmra.mxu0 %vm995_vm2, %v1637_v6 }
 0x306   : > { %1323 = vmatprep.mubr.bf16.mxu0 %v1653_v1 }
 0x307   : > { %v1150_v39 = vpop.permute.xlu0 %1149 }
 0x30b   : > { %v1140_v47 = vpop.permute.xlu0 %1139 }
 0x30d   : > { %1597 = vmatmul.mubr.msk.bf16.gmra.mxu0 %vm995_vm2, %v1638_v28 }
 0x30e   : > { %1333 = vmatprep.mubr.bf16.mxu0 %v1653_v1 }
 0x315   : > { %1598 = vmatmul.mubr.msk.bf16.gmra.mxu0 %vm995_vm2, %v1639_v29 }
 0x316   : > { %1343 = vmatprep.mubr.bf16.mxu0 %v1653_v1 }
 0x31d   : > { %1599 = vmatmul.mubr.msk.bf16.gmra.mxu0 %vm995_vm2, %v1640_v34 }
 0x31e   : > { %1353 = vmatprep.mubr.bf16.mxu0 %v1653_v1 }
 0x325   : > { %1600 = vmatmul.mubr.msk.bf16.gmra.mxu0 %vm995_vm2, %v1641_v9 }
 0x326   : > { %1363 = vmatprep.mubr.bf16.mxu0 %v1653_v1 }
 0x32d   : > { %1601 = vmatmul.mubr.msk.bf16.gmra.mxu0 %vm995_vm2, %v1642_v23 }
 0x32e   : > { %1373 = vmatprep.mubr.bf16.mxu0 %v1653_v1 }
 0x335   : > { %1602 = vmatmul.mubr.msk.bf16.gmra.mxu0 %vm995_vm2, %v1643_v35 }
 0x336   : > { %1383 = vmatprep.mubr.bf16.mxu0 %v1653_v1  ;;  %v2056_v1 = vpop.permute.xlu1 %1184 }
 0x33a   : > { %v2060_v41 = vpop.permute.xlu1 %1174 }
 0x33d   : > { %1603 = vmatmul.mubr.msk.bf16.gmra.mxu0 %vm995_vm2, %v1644_v36 }
 0x33e   : > { %v2064_v44 = vpop.permute.xlu1 %1164 }
 0x342   : > { %v1155_v45 = vpop.permute.xlu1 %1154 }
 0x346   : > { %v1145_v49 = vpop.permute.xlu1 %1144 }
 0x3c5   : > { %v1315_v46 = vpop.f32.mrf.mxu0 }
 0x3c6   : > { %v1316_v21 = vadd.f32 %v1315_v46, %v1140_v47 }
 0x3c7   : > { %v1317_v48 = vpop.f32.mrf.mxu0 }
 0x3c8   : > { %v1318_v50 = vadd.f32 %v1317_v48, %v1140_v47  ;;  %v1394_v43 = vmax.f32 %v1316_v21, 0.0 }
 0x3c9   : > { %v1319_v27 = vpop.f32.mrf.mxu0 }
 0x3ca   : > { %v1320_v51 = vadd.f32 %v1319_v27, %v1145_v49  ;;  %v1395_v53 = vmax.f32 %v1318_v50, 0.0 }
 0x3cb   : > { %v1321_v31 = vpop.f32.mrf.mxu0 }
 0x3cc   : > { %v1396_v52 = vmax.f32 %v1320_v51, 0.0  ;;  %v1322_v11 = vadd.f32 %v1321_v31, %v1145_v49 }
 0x3cd   : > { %v1325_v19 = vpop.f32.mrf.mxu0 }
 0x3ce   : > { %v2066_v24 = vpack.c.bf16 %v1396_v52, %v1394_v43  ;;  %v1397_v54 = vmax.f32 %v1322_v11, 0.0  ;;  %v1326_v56 = vadd.f32 %v1325_v19, %v1150_v39 }
 0x3cf   : > { %v1327_v16 = vpop.f32.mrf.mxu0 }
 0x3d0   : > { %v2068_v55 = vpack.c.bf16 %v1397_v54, %v1395_v53  ;;  %v1328_v0 = vadd.f32 %v1327_v16, %v1150_v39  ;;  %v1398_v59 = vmax.f32 %v1326_v56, 0.0 }
 0x3d1   : > { %v1329_v57 = vpop.f32.mrf.mxu0 }
 0x3d2   : > { %v1330_v58 = vadd.f32 %v1329_v57, %v1155_v45  ;;  %v1399_v7 = vmax.f32 %v1328_v0, 0.0 }
 0x3d3   : > { %v1331_v8 = vpop.f32.mrf.mxu0 }
 0x3d4   : > { %v1400_v60 = vmax.f32 %v1330_v58, 0.0  ;;  %v1332_v61 = vadd.f32 %v1331_v8, %v1155_v45 }
 0x3d5   : > { %v2070_v13 = vpop.f32.mrf.mxu0 }
 0x3d6   : > { %v2072_v15 = vpack.c.bf16 %v1400_v60, %v1398_v59  ;;  %v1401_v5 = vmax.f32 %v1332_v61, 0.0 }
 0x3d7   : > { %v2074_v18 = vpop.f32.mrf.mxu0 }
 0x3d8   : > { %v2076_v17 = vpack.c.bf16 %v1401_v5, %v1399_v7 }
 0x3d9   : > { %v2078_v62 = vpop.f32.mrf.mxu0 }
 0x3db   : > { %v2080_v3 = vpop.f32.mrf.mxu0 }
 0x3dd   : > { %v2082_v22 = vpop.f32.mrf.mxu0 }
 0x3df   : > { %v1347_v25 = vpop.f32.mrf.mxu0 }
 0x3e1   : > { %v1349_v14 = vpop.f32.mrf.mxu0 }
 0x3e3   : > { %v1351_v20 = vpop.f32.mrf.mxu0 }
 0x3e5   : > { %v1355_v10 = vpop.f32.mrf.mxu0 }
 0x3e7   : > { %v1357_v12 = vpop.f32.mrf.mxu0 }
 0x3e9   : > { %v1359_v26 = vpop.f32.mrf.mxu0 }
 0x3ea   : > { %v1360_v5 = vadd.f32 %v1359_v26, %v2056_v1 }
 0x3eb   : > { %v1361_v32 = vpop.f32.mrf.mxu0 }
 0x3ed   : > { %v1365_v6 = vpop.f32.mrf.mxu0 }
 0x3ee   : > { %v1366_v60 = vadd.f32 %v1365_v6, %v2050_v38 }
 0x3ef   : > { %v1367_v28 = vpop.f32.mrf.mxu0 }
 0x3f0   : > { %v1368_v56 = vadd.f32 %v1367_v28, %v2050_v38  ;;  %v1348_v38 = vadd.f32 %v1347_v25, %v2058_v40 }
 0x3f1   : > { %v1369_v29 = vpop.f32.mrf.mxu0 }
 0x3f2   : > { %v1370_v0 = vadd.f32 %v1369_v29, %v2052_v63  ;;  %v1415_v7 = vmax.f32 %v1368_v56, 0.0  ;;  %v1407_v25 = vmax.f32 %v1348_v38, 0.0 }
 0x3f3   : > { %v1371_v34 = vpop.f32.mrf.mxu0 }
 0x3f4   : > { %v1372_v52 = vadd.f32 %v1371_v34, %v2052_v63  ;;  %v1416_v28 = vmax.f32 %v1370_v0, 0.0  ;;  %v1352_v63 = vadd.f32 %v1351_v20, %v2060_v41  ;;  %v1346_v20 = vadd.f32 %v2082_v22, %v2058_v40 }
 0x3f5   : > { %v1375_v9 = vpop.f32.mrf.mxu0 }
 0x3f6   : > { %v1376_v54 = vadd.f32 %v1375_v9, %v2046_v4  ;;  %v1409_v26 = vmax.f32 %v1352_v63, 0.0 }
 0x3f7   : > { %v1377_v23 = vpop.f32.mrf.mxu0 }
 0x3f8   : > { %v1378_v50 = vadd.f32 %v1377_v23, %v2046_v4  ;;  %v1418_v61 = vmax.f32 %v1376_v54, 0.0  ;;  %v1358_v4 = vadd.f32 %v1357_v12, %v2054_v30  ;;  %v1414_v23 = vmax.f32 %v1366_v60, 0.0 }
 0x3f9   : > { %v1379_v35 = vpop.f32.mrf.mxu0  ;;  %v1350_v12 = vadd.f32 %v1349_v14, %v2060_v41  ;;  %v1340_v41 = vadd.f32 %v2078_v62, %v2064_v44 }
 0x3fa   : > { %v1380_v31 = vadd.f32 %v1379_v35, %v2048_v33  ;;  %v1419_v57 = vmax.f32 %v1378_v50, 0.0  ;;  %v1411_v6 = vmax.f32 %v1358_v4, 0.0  ;;  %v1412_v35 = vmax.f32 %v1360_v5, 0.0 }
 0x3fb   : > { %v1381_v36 = vpop.f32.mrf.mxu0  ;;  %v1408_v14 = vmax.f32 %v1350_v12, 0.0  ;;  %v1404_v22 = vmax.f32 %v1340_v41, 0.0 }
 0x3fc   : > { %v1382_v47 = vadd.f32 %v1381_v36, %v2048_v33  ;;  %v1420_v58 = vmax.f32 %v1380_v31, 0.0  ;;  %v1417_v33 = vmax.f32 %v1372_v52, 0.0  ;;  %v1436_v36 = vpack.c.bf16 %v1416_v28, %v1414_v23 }
 0x3fd   : > { %v1385_v39 = vpop.f32.mrf.mxu0 }
 0x3fe   : > { %v1386_v49 = vadd.f32 %v1385_v39, %v2042_v2  ;;  %v1421_v11 = vmax.f32 %v1382_v47, 0.0  ;;  %v1438_v34 = vpack.c.bf16 %v1420_v58, %v1418_v61  ;;  %v1437_v9 = vpack.c.bf16 %v1417_v33, %v1415_v7 }
 0x3ff   : > { %v1387_v45 = vpop.f32.mrf.mxu0  ;;  %v1433_v47 = vpack.c.bf16 %v1409_v26, %v1407_v25 }
 0x400   : > { %v1388_v48 = vadd.f32 %v1387_v45, %v2042_v2  ;;  %v1422_v16 = vmax.f32 %v1386_v49, 0.0  ;;  %v1439_v59 = vpack.c.bf16 %v1421_v11, %v1419_v57 }
 0x401   : > { %v1389_v46 = vpop.f32.mrf.mxu0 }
 0x402   : > { %v1390_v21 = vadd.f32 %v1389_v46, %v2044_v37  ;;  %v1423_v19 = vmax.f32 %v1388_v48, 0.0  ;;  %v1406_v48 = vmax.f32 %v1346_v20, 0.0 }
 0x403   : > { %v1391_v27 = vpop.f32.mrf.mxu0 }
 0x404   : > { %v1392_v51 = vadd.f32 %v1391_v27, %v2044_v37  ;;  %v1424_v43 = vmax.f32 %v1390_v21, 0.0  ;;  %v1362_v37 = vadd.f32 %v1361_v32, %v2056_v1  ;;  %v1356_v32 = vadd.f32 %v1355_v10, %v2054_v30 }
 0x405   : > { %v1342_v1 = vadd.f32 %v2080_v3, %v2064_v44  ;;  %v1338_v30 = vadd.f32 %v2074_v18, %v2062_v42  ;;  %v1336_v3 = vadd.f32 %v2070_v13, %v2062_v42  ;;  %v1432_v21 = vpack.c.bf16 %v1408_v14, %v1406_v48  ;;  %v1442_v42 = vld [vmem:[%s2136_s9] sm:$0xf]  ;;  %v1447_v44 = vpop.permute.xlu0 %1446 }
 0x406   : > { %v1425_v53 = vmax.f32 %v1392_v51, 0.0  ;;  %v1440_v8 = vpack.c.bf16 %v1424_v43, %v1422_v16  ;;  %v1413_v29 = vmax.f32 %v1362_v37, 0.0  ;;  %v1410_v45 = vmax.f32 %v1356_v32, 0.0 }
 0x407   : > { %v1405_v46 = vmax.f32 %v1342_v1, 0.0  ;;  %v1403_v40 = vmax.f32 %v1338_v30, 0.0  ;;  %v1402_v49 = vmax.f32 %v1336_v3, 0.0 }
 0x408   : > { %v1441_v2 = vpack.c.bf16 %v1425_v53, %v1423_v19  ;;  %v1435_v39 = vpack.c.bf16 %v1413_v29, %v1411_v6  ;;  %v1434_v10 = vpack.c.bf16 %v1412_v35, %v1410_v45 }
 0x409   : > { %v1431_v18 = vpack.c.bf16 %v1405_v46, %v1403_v40  ;;  %v1430_v27 = vpack.c.bf16 %v1404_v22, %v1402_v49 }
 0x40a   : > { %1449 = vmatprep.subr.bf16.mxu1 %v1441_v2 }
 0x40b   : > { %1450 = vmatpush1.bf16.msra.mxu1 %v1440_v8 }
 0x40c   : > { %1451 = vmatprep.subr.bf16.mxu1 %v1439_v59 }
 0x40f   : > { %1452 = vmatpush1.bf16.msra.mxu1 %v1438_v34 }
 0x410   : > { %1453 = vmatprep.subr.bf16.mxu1 %v1437_v9 }
 0x413   : > { %1454 = vmatpush1.bf16.msra.mxu1 %v1436_v36 }
 0x414   : > { %1455 = vmatprep.subr.bf16.mxu1 %v1435_v39 }
 0x417   : > { %1456 = vmatpush1.bf16.msra.mxu1 %v1434_v10 }
 0x418   : > { %1457 = vmatprep.subr.bf16.mxu1 %v1433_v47 }
 0x41b   : > { %1458 = vmatpush1.bf16.msra.mxu1 %v1432_v21 }
 0x41c   : > { %1459 = vmatprep.subr.bf16.mxu1 %v1431_v18 }
 0x41f   : > { %1460 = vmatpush1.bf16.msra.mxu1 %v1430_v27 }
 0x420   : > { %1461 = vmatprep.subr.bf16.mxu1 %v2076_v17 }
 0x423   : > { %1462 = vmatpush1.bf16.msra.mxu1 %v2072_v15 }
 0x424   : > { %1463 = vmatprep.subr.bf16.mxu1 %v2068_v55 }
 0x427   : > { %1464 = vmatpush1.bf16.msra.mxu1 %v2066_v24 }
 0x42a   : > { %1482 = vmatmul.mubr.bf16.vlgmr.msra.gmra.mxu1 %v1442_v42 }
 0x4ea   : > { %v1483_v13 = vpop.f32.mrf.mxu1 }
 0x4eb   : > { %v1484_v62 = vadd.f32 %v1483_v13, %v1447_v44 }
 0x4ec   : > { %v1485_v17 = vpop.f32.mrf.mxu1 }
 0x4ed   : > { %1490 = vst [vmem:[%s388_s22] sm:$0xff] %v1484_v62  ;;  %v1486_v15 = vadd.f32 %v1485_v17, %v1447_v44 }
 0x4ee   : > { %v1487_v50 = vpop.f32.mrf.mxu1 }
 0x4ef   : > { %1491 = vst [vmem:[%s388_s22 + $0x8] sm:$0xff] %v1486_v15 }
 0x4f0   : > { %v1488_v55 = vpop.f32.mrf.mxu1 }
 0x4f1 PF: > { %s21_s17 = sadd.s32 1, %s1651_s17  }
 0x4f2   : > { %p18_p4 = scmp.ge.s32.totalorder %s21_s17, 4  }
 0x4f4   :  { %20 = sbr.rel (!%p18_p4) target bundleno = 1 (0x1), region = 94 }

</bundles_post_ra>
